<compile_context>
chip_gen: v5e
topology: v5e:2x2
jax: 0.10.0
libtpu: 0.0.40
codegen_flags: <defaults>
</compile_context>

<pallas_src>
import functools

import jax
import jax.numpy as jnp
from jax.experimental import pallas as pl
from jax.experimental.pallas import tpu as pltpu

LANE = 128      # vreg lane width  (last-dim tiling unit)
SUBLANE = 8     # vreg sublane height (second-to-last-dim tiling unit)


def _round_up(x, m):
    return (x + m - 1) // m * m


def _mlp_kernel(n_linear, *refs):
    """Whole MLP for one row tile, fully VMEM-resident.

    refs = (x_ref, w0, b0, w1, b1, ..., w_{L-1}, b_{L-1}, o_ref)
      x_ref : [TM, in_dim]   f32, unpadded feature dim
      w_i   : [Kp_i, Np_i]   bf16 (zero padding -> exact math)
      b_i   : [1,  Np_i]     f32
      o_ref : [TM, out_dim]  f32, only the real output columns
    """
    x_ref = refs[0]
    o_ref = refs[-1]
    wb = refs[1:-1]

    h = x_ref[...]                                   # f32 [TM, in_dim]
    for li in range(n_linear):
        w = wb[2 * li][...]                          # bf16
        b = wb[2 * li + 1][...]                      # f32
        # bf16 operands on the MXU, f32 accumulation.
        h = jnp.dot(h.astype(jnp.bfloat16), w,
                    preferred_element_type=jnp.float32) + b
        if li < n_linear - 1:                        # ReLU on all but the last
            h = jnp.maximum(h, 0.0)
    o_ref[...] = h.astype(o_ref.dtype)


def mlp_channel_estimation_forward(positions, signals, params, *,
                                   row_tile=2048):
    """positions: [B, n, pos_dim], signals: [B, n, sig_dim] -> [B, n, out]."""
    B, n, pos_dim = positions.shape
    sig_dim = signals.shape[-1]
    out_dim = params[-1][0].shape[1]
    n_linear = len(params)

    x = jnp.concatenate([positions, signals], axis=-1)
    x = x.reshape(B * n, pos_dim + sig_dim).astype(jnp.float32)
    N, in_dim = x.shape

    # --- row tiling (sublane-aligned, >= 2 grid steps for v7x when possible) -
    N_sub = _round_up(N, SUBLANE)
    tm = _round_up(min(row_tile, N_sub), SUBLANE)
    if tm >= N_sub and N_sub > SUBLANE:
        # Split into (at least) two row tiles so the "parallel" grid axis can
        # shard across both TensorCores on v7x.
        tm = _round_up((N_sub + 1) // 2, SUBLANE)
    N_pad = _round_up(N_sub, tm)
    if N_pad != N:
        x = jnp.pad(x, ((0, N_pad - N), (0, 0)))

    # --- weight padding / bf16 casting (hidden dims -> 128 lanes, exact) ----
    padded = []
    prev_p = in_dim                    # layer-0 contraction stays at K=in_dim
    for li, (w, b) in enumerate(params):
        di, do = w.shape
        do_p = do if li == n_linear - 1 else _round_up(do, LANE)
        w_p = jnp.zeros((prev_p, do_p), jnp.float32).at[:di, :do].set(w)
        w_p = w_p.astype(jnp.bfloat16)             # MXU operand dtype
        b_p = jnp.zeros((1, do_p), jnp.float32).at[:, :do].set(b)
        padded.append((w_p, b_p))
        prev_p = do_p

    # --- single fused pallas_call over row tiles -----------------------------
    grid = (N_pad // tm,)
    in_specs = [pl.BlockSpec((tm, in_dim), lambda i: (i, 0))]
    flat_args = [x]
    for (w_p, b_p) in padded:
        # Constant block index -> weights are DMA'd once and stay resident
        # across all row tiles.
        in_specs.append(pl.BlockSpec(w_p.shape, lambda i: (0, 0)))
        in_specs.append(pl.BlockSpec(b_p.shape, lambda i: (0, 0)))
        flat_args += [w_p, b_p]
    out_spec = pl.BlockSpec((tm, out_dim), lambda i: (i, 0))

    # Real (unpadded) work so XLA's scheduler is not misled.
    flops = 2 * N * sum(w.shape[0] * w.shape[1] for w, _ in params)
    bytes_accessed = (4 * N * in_dim + 4 * N * out_dim
                      + sum(2 * wp.size + 4 * bp.size for wp, bp in padded))

    y_p = pl.pallas_call(
        functools.partial(_mlp_kernel, n_linear),
        out_shape=jax.ShapeDtypeStruct((N_pad, out_dim), jnp.float32),
        grid=grid,
        in_specs=in_specs,
        out_specs=out_spec,
        compiler_params=pltpu.CompilerParams(
            dimension_semantics=("parallel",),
            # Explicit budget: safe on v7x (64 MiB physical / 32 MiB default
            # scoped) as well as v5e/v6e (128 MiB).
            vmem_limit_bytes=32 * 1024 * 1024),
        cost_estimate=pl.CostEstimate(
            flops=flops, transcendentals=0, bytes_accessed=bytes_accessed),
    )(*flat_args)

    return y_p[:N].reshape(B, n, out_dim)


def init_params(key, pos_dim=1, sig_dim=8, hidden_dim=64, num_layers=4,
                output_dim=2):
    """nn.Linear-style init; weights stored [in, out] for x @ W form."""
    dims = [pos_dim + sig_dim] + [hidden_dim] * num_layers + [output_dim]
    params = []
    for di, do in zip(dims[:-1], dims[1:]):
        kw, kb, key = jax.random.split(key, 3)
        bound = 1.0 / jnp.sqrt(di)
        w = jax.random.uniform(kw, (di, do), jnp.float32, -bound, bound)
        b = jax.random.uniform(kb, (1, do), jnp.float32, -bound, bound)
        params.append((w, b))
    return params


def reference_forward(positions, signals, params):
    """Pure-JAX f32 reference of the same forward (sanity check)."""
    B, n, _ = positions.shape
    x = jnp.concatenate([positions, signals], axis=-1)
    h = x.reshape(B * n, -1).astype(jnp.float32)
    for li, (w, b) in enumerate(params):
        h = h @ w + b
        if li < len(params) - 1:
            h = jnp.maximum(h, 0.0)
    return h.reshape(B, n, -1)


if __name__ == "__main__":
    # Small shapes consistent with the module defaults.
    batch = 2
    n_antennas = 16
    pos_dim, sig_dim = 1, 8
    hidden_dim, num_layers, output_dim = 64, 4, 2

    key = jax.random.PRNGKey(0)
    kpos, ksig, kpar = jax.random.split(key, 3)
    positions = jax.random.normal(kpos, (batch, n_antennas, pos_dim),
                                  dtype=jnp.float32)
    signals = jax.random.normal(ksig, (batch, n_antennas, sig_dim),
                                dtype=jnp.float32)
    params = init_params(kpar, pos_dim, sig_dim, hidden_dim, num_layers,
                         output_dim)

    out = mlp_channel_estimation_forward(positions, signals, params)
    out = jax.block_until_ready(out)

    ref = reference_forward(positions, signals, params)
    assert out.shape == (batch, n_antennas, output_dim)
    # bf16 MXU operands with f32 accumulation -> relaxed tolerance vs f32 ref.
    max_err = float(jnp.max(jnp.abs(out - ref)))
    assert jnp.allclose(out, ref, atol=2e-2, rtol=2e-2), f"max_err={max_err}"

    print("KERNEL_OK")
</pallas_src>

<mosaic_0001>
module attributes {stable_mosaic.version = 11 : i64} {
  func.func @_mlp_kernel(%arg0: i32, %arg1: memref<16x9xf32, #tpu.memory_space<vmem>>, %arg2: memref<9x128xbf16, #tpu.memory_space<vmem>>, %arg3: memref<1x128xf32, #tpu.memory_space<vmem>>, %arg4: memref<128x128xbf16, #tpu.memory_space<vmem>>, %arg5: memref<1x128xf32, #tpu.memory_space<vmem>>, %arg6: memref<128x128xbf16, #tpu.memory_space<vmem>>, %arg7: memref<1x128xf32, #tpu.memory_space<vmem>>, %arg8: memref<128x128xbf16, #tpu.memory_space<vmem>>, %arg9: memref<1x128xf32, #tpu.memory_space<vmem>>, %arg10: memref<128x2xbf16, #tpu.memory_space<vmem>>, %arg11: memref<1x2xf32, #tpu.memory_space<vmem>>, %arg12: memref<16x2xf32, #tpu.memory_space<vmem>>) attributes {dimension_semantics = [#tpu.dimension_semantics<parallel>], iteration_bounds = array<i64: 2>, scalar_prefetch = 0 : i64, scratch_operands = 0 : i64, tpu.core_type = #tpu.core_type<tc>, window_params = [{transform_indices = @transform_0, window_bounds = array<i64: 16, 9>}, {pipeline_mode = #tpu.pipeline_mode<synchronous>, transform_indices = @transform_1, window_bounds = array<i64: 9, 128>}, {pipeline_mode = #tpu.pipeline_mode<synchronous>, transform_indices = @transform_2, window_bounds = array<i64: 1, 128>}, {pipeline_mode = #tpu.pipeline_mode<synchronous>, transform_indices = @transform_3, window_bounds = array<i64: 128, 128>}, {pipeline_mode = #tpu.pipeline_mode<synchronous>, transform_indices = @transform_4, window_bounds = array<i64: 1, 128>}, {pipeline_mode = #tpu.pipeline_mode<synchronous>, transform_indices = @transform_5, window_bounds = array<i64: 128, 128>}, {pipeline_mode = #tpu.pipeline_mode<synchronous>, transform_indices = @transform_6, window_bounds = array<i64: 1, 128>}, {pipeline_mode = #tpu.pipeline_mode<synchronous>, transform_indices = @transform_7, window_bounds = array<i64: 128, 128>}, {pipeline_mode = #tpu.pipeline_mode<synchronous>, transform_indices = @transform_8, window_bounds = array<i64: 1, 128>}, {pipeline_mode = #tpu.pipeline_mode<synchronous>, transform_indices = @transform_9, window_bounds = array<i64: 128, 2>}, {pipeline_mode = #tpu.pipeline_mode<synchronous>, transform_indices = @transform_10, window_bounds = array<i64: 1, 2>}, {transform_indices = @transform_11, window_bounds = array<i64: 16, 2>}]} {
    %c0 = arith.constant 0 : index
    %c0_0 = arith.constant 0 : index
    %0 = vector.load %arg1[%c0, %c0_0] : memref<16x9xf32, #tpu.memory_space<vmem>>, vector<16x9xf32>
    %c0_1 = arith.constant 0 : index
    %c0_2 = arith.constant 0 : index
    %1 = vector.load %arg2[%c0_1, %c0_2] : memref<9x128xbf16, #tpu.memory_space<vmem>>, vector<9x128xbf16>
    %c0_3 = arith.constant 0 : index
    %c0_4 = arith.constant 0 : index
    %2 = vector.load %arg3[%c0_3, %c0_4] : memref<1x128xf32, #tpu.memory_space<vmem>>, vector<1x128xf32>
    %3 = arith.truncf %0 : vector<16x9xf32> to vector<16x9xbf16>
    %cst = arith.constant dense<0.000000e+00> : vector<16x128xf32>
    %4 = tpu.matmul %3, %1, %cst {dimension_numbers = #tpu.dot_dimension_numbers<[1], [0], [0], [1], [0, 0, 1, 1], [], []>} : vector<16x9xbf16>, vector<9x128xbf16>, vector<16x128xf32> -> vector<16x128xf32>
    %5 = vector.broadcast %2 : vector<1x128xf32> to vector<16x128xf32>
    %6 = arith.addf %4, %5 : vector<16x128xf32>
    %cst_5 = arith.constant 0.000000e+00 : f32
    %7 = vector.broadcast %cst_5 : f32 to vector<16x128xf32>
    %8 = arith.maximumf %6, %7 : vector<16x128xf32>
    %c0_6 = arith.constant 0 : index
    %c0_7 = arith.constant 0 : index
    %9 = vector.load %arg4[%c0_6, %c0_7] : memref<128x128xbf16, #tpu.memory_space<vmem>>, vector<128x128xbf16>
    %c0_8 = arith.constant 0 : index
    %c0_9 = arith.constant 0 : index
    %10 = vector.load %arg5[%c0_8, %c0_9] : memref<1x128xf32, #tpu.memory_space<vmem>>, vector<1x128xf32>
    %11 = arith.truncf %8 : vector<16x128xf32> to vector<16x128xbf16>
    %cst_10 = arith.constant dense<0.000000e+00> : vector<16x128xf32>
    %12 = tpu.matmul %11, %9, %cst_10 {dimension_numbers = #tpu.dot_dimension_numbers<[1], [0], [0], [1], [0, 0, 1, 1], [], []>} : vector<16x128xbf16>, vector<128x128xbf16>, vector<16x128xf32> -> vector<16x128xf32>
    %13 = vector.broadcast %10 : vector<1x128xf32> to vector<16x128xf32>
    %14 = arith.addf %12, %13 : vector<16x128xf32>
    %cst_11 = arith.constant 0.000000e+00 : f32
    %15 = vector.broadcast %cst_11 : f32 to vector<16x128xf32>
    %16 = arith.maximumf %14, %15 : vector<16x128xf32>
    %c0_12 = arith.constant 0 : index
    %c0_13 = arith.constant 0 : index
    %17 = vector.load %arg6[%c0_12, %c0_13] : memref<128x128xbf16, #tpu.memory_space<vmem>>, vector<128x128xbf16>
    %c0_14 = arith.constant 0 : index
    %c0_15 = arith.constant 0 : index
    %18 = vector.load %arg7[%c0_14, %c0_15] : memref<1x128xf32, #tpu.memory_space<vmem>>, vector<1x128xf32>
    %19 = arith.truncf %16 : vector<16x128xf32> to vector<16x128xbf16>
    %cst_16 = arith.constant dense<0.000000e+00> : vector<16x128xf32>
    %20 = tpu.matmul %19, %17, %cst_16 {dimension_numbers = #tpu.dot_dimension_numbers<[1], [0], [0], [1], [0, 0, 1, 1], [], []>} : vector<16x128xbf16>, vector<128x128xbf16>, vector<16x128xf32> -> vector<16x128xf32>
    %21 = vector.broadcast %18 : vector<1x128xf32> to vector<16x128xf32>
    %22 = arith.addf %20, %21 : vector<16x128xf32>
    %cst_17 = arith.constant 0.000000e+00 : f32
    %23 = vector.broadcast %cst_17 : f32 to vector<16x128xf32>
    %24 = arith.maximumf %22, %23 : vector<16x128xf32>
    %c0_18 = arith.constant 0 : index
    %c0_19 = arith.constant 0 : index
    %25 = vector.load %arg8[%c0_18, %c0_19] : memref<128x128xbf16, #tpu.memory_space<vmem>>, vector<128x128xbf16>
    %c0_20 = arith.constant 0 : index
    %c0_21 = arith.constant 0 : index
    %26 = vector.load %arg9[%c0_20, %c0_21] : memref<1x128xf32, #tpu.memory_space<vmem>>, vector<1x128xf32>
    %27 = arith.truncf %24 : vector<16x128xf32> to vector<16x128xbf16>
    %cst_22 = arith.constant dense<0.000000e+00> : vector<16x128xf32>
    %28 = tpu.matmul %27, %25, %cst_22 {dimension_numbers = #tpu.dot_dimension_numbers<[1], [0], [0], [1], [0, 0, 1, 1], [], []>} : vector<16x128xbf16>, vector<128x128xbf16>, vector<16x128xf32> -> vector<16x128xf32>
    %29 = vector.broadcast %26 : vector<1x128xf32> to vector<16x128xf32>
    %30 = arith.addf %28, %29 : vector<16x128xf32>
    %cst_23 = arith.constant 0.000000e+00 : f32
    %31 = vector.broadcast %cst_23 : f32 to vector<16x128xf32>
    %32 = arith.maximumf %30, %31 : vector<16x128xf32>
    %c0_24 = arith.constant 0 : index
    %c0_25 = arith.constant 0 : index
    %33 = vector.load %arg10[%c0_24, %c0_25] : memref<128x2xbf16, #tpu.memory_space<vmem>>, vector<128x2xbf16>
    %c0_26 = arith.constant 0 : index
    %c0_27 = arith.constant 0 : index
    %34 = vector.load %arg11[%c0_26, %c0_27] : memref<1x2xf32, #tpu.memory_space<vmem>>, vector<1x2xf32>
    %35 = arith.truncf %32 : vector<16x128xf32> to vector<16x128xbf16>
    %cst_28 = arith.constant dense<0.000000e+00> : vector<16x2xf32>
    %36 = tpu.matmul %35, %33, %cst_28 {dimension_numbers = #tpu.dot_dimension_numbers<[1], [0], [0], [1], [0, 0, 1, 1], [], []>} : vector<16x128xbf16>, vector<128x2xbf16>, vector<16x2xf32> -> vector<16x2xf32>
    %37 = vector.broadcast %34 : vector<1x2xf32> to vector<16x2xf32>
    %38 = arith.addf %36, %37 : vector<16x2xf32>
    %c0_29 = arith.constant 0 : index
    %c0_30 = arith.constant 0 : index
    %39 = vector.load %arg12[%c0_29, %c0_30] : memref<16x2xf32, #tpu.memory_space<vmem>>, vector<16x2xf32>
    tpu.vector_store %arg12[%c0_29, %c0_30], %38 {strides = array<i32>} : memref<16x2xf32, #tpu.memory_space<vmem>>, vector<16x2xf32>,
    return
  }
  func.func @transform_0(%arg0: i32) -> (i32, i32) {
    %c0_i32 = arith.constant 0 : i32
    %c0_i32_0 = arith.constant 0 : i32
    return %arg0, %c0_i32 : i32, i32
  }
  func.func @transform_1(%arg0: i32) -> (i32, i32) {
    %c0_i32 = arith.constant 0 : i32
    %c0_i32_0 = arith.constant 0 : i32
    %c0_i32_1 = arith.constant 0 : i32
    return %c0_i32, %c0_i32_0 : i32, i32
  }
  func.func @transform_2(%arg0: i32) -> (i32, i32) {
    %c0_i32 = arith.constant 0 : i32
    %c0_i32_0 = arith.constant 0 : i32
    %c0_i32_1 = arith.constant 0 : i32
    return %c0_i32, %c0_i32_0 : i32, i32
  }
  func.func @transform_3(%arg0: i32) -> (i32, i32) {
    %c0_i32 = arith.constant 0 : i32
    %c0_i32_0 = arith.constant 0 : i32
    %c0_i32_1 = arith.constant 0 : i32
    return %c0_i32, %c0_i32_0 : i32, i32
  }
  func.func @transform_4(%arg0: i32) -> (i32, i32) {
    %c0_i32 = arith.constant 0 : i32
    %c0_i32_0 = arith.constant 0 : i32
    %c0_i32_1 = arith.constant 0 : i32
    return %c0_i32, %c0_i32_0 : i32, i32
  }
  func.func @transform_5(%arg0: i32) -> (i32, i32) {
    %c0_i32 = arith.constant 0 : i32
    %c0_i32_0 = arith.constant 0 : i32
    %c0_i32_1 = arith.constant 0 : i32
    return %c0_i32, %c0_i32_0 : i32, i32
  }
  func.func @transform_6(%arg0: i32) -> (i32, i32) {
    %c0_i32 = arith.constant 0 : i32
    %c0_i32_0 = arith.constant 0 : i32
    %c0_i32_1 = arith.constant 0 : i32
    return %c0_i32, %c0_i32_0 : i32, i32
  }
  func.func @transform_7(%arg0: i32) -> (i32, i32) {
    %c0_i32 = arith.constant 0 : i32
    %c0_i32_0 = arith.constant 0 : i32
    %c0_i32_1 = arith.constant 0 : i32
    return %c0_i32, %c0_i32_0 : i32, i32
  }
  func.func @transform_8(%arg0: i32) -> (i32, i32) {
    %c0_i32 = arith.constant 0 : i32
    %c0_i32_0 = arith.constant 0 : i32
    %c0_i32_1 = arith.constant 0 : i32
    return %c0_i32, %c0_i32_0 : i32, i32
  }
  func.func @transform_9(%arg0: i32) -> (i32, i32) {
    %c0_i32 = arith.constant 0 : i32
    %c0_i32_0 = arith.constant 0 : i32
    %c0_i32_1 = arith.constant 0 : i32
    return %c0_i32, %c0_i32_0 : i32, i32
  }
  func.func @transform_10(%arg0: i32) -> (i32, i32) {
    %c0_i32 = arith.constant 0 : i32
    %c0_i32_0 = arith.constant 0 : i32
    %c0_i32_1 = arith.constant 0 : i32
    return %c0_i32, %c0_i32_0 : i32, i32
  }
  func.func @transform_11(%arg0: i32) -> (i32, i32) {
    %c0_i32 = arith.constant 0 : i32
    %c0_i32_0 = arith.constant 0 : i32
    return %arg0, %c0_i32 : i32, i32
  }
}

</mosaic_0001>

<bundles_post_ra>
// kernel: tpu_custom_call.1
= control target key start
LH: loop header
LB: loop body
LE: loop exit
PB: predicated region body
PF: predicated region fallthrough
CT: control target
= control target key end

     0   :  { %16 = vsyncpa [#allocation3], 0  ;;  %s1365_s0 = inlined_call_operand.vmem [shape: f32[32,9], index: 0, kind: input, shape index: {}]   ;;  %s1366_s1 = inlined_call_operand.vmem [shape: bf16[9,128], index: 1, kind: input, shape index: {}]   ;;  %s1367_s2 = inlined_call_operand.vmem [shape: f32[1,128], index: 2, kind: input, shape index: {}]   ;;  %s1368_s3 = inlined_call_operand.vmem [shape: bf16[128,128], index: 3, kind: input, shape index: {}]   ;;  %s1369_s4 = inlined_call_operand.vmem [shape: f32[1,128], index: 4, kind: input, shape index: {}]   ;;  %s1370_s5 = inlined_call_operand.hbm [shape: bf16[128,128], index: 5, kind: input, shape index: {}]   ;;  %s1371_s6 = inlined_call_operand.vmem [shape: f32[1,128], index: 6, kind: input, shape index: {}]   ;;  %s1372_s7 = inlined_call_operand.hbm [shape: bf16[128,128], index: 7, kind: input, shape index: {}]   ;;  %s1373_s8 = inlined_call_operand.vmem [shape: f32[1,128], index: 8, kind: input, shape index: {}]   ;;  %s1374_s9 = inlined_call_operand.vmem [shape: bf16[128,2], index: 9, kind: input, shape index: {}]   ;;  %s1375_s10 = inlined_call_operand.vmem [shape: f32[1,2], index: 10, kind: input, shape index: {}]   ;;  %s1376_s11 = inlined_call_operand.vmem [shape: f32[32,2], index: 11, kind: output, shape index: {}]  }
   0x1   :  { %17 = vsyncpa [#allocation5], 0  ;;  %s1244_s17 = smov 0  }
   0x2 LB: > { %s313_s20 = sshll.u32 %s1370_s5, 4  ;;  %s885_s21 = sadd.s32 4294967295, %s1177_s17   ;;  %s1177_s17 = sphi %s1244_s17, %s23_s17   ;;  %s314_s20 = int_to_ptr.hbm [resolvable:$true] %s313_s20 }
   0x3   : > { %p887_p0 = scmp.ge.s32.totalorder %s1177_s17, 1  ;;  %p290_p1 = scmp.lt.s32.totalorder %s1177_s17, 3 }
   0x4   : > { %p1255_p2 = scmp.eq.s32.totalorder %s885_s21, 0  ;;  %s1179_s24 = smov [#allocation2]  }
   0x5   : > { %p1259_p3 = pnand %p887_p0, %p290_p1  ;;  %s315_s25 = sshll.u32 %s1179_s24, 4  ;;  %s316_s25 = int_to_ptr.vmem [resolvable:$true] %s315_s25 }
   0x6   : > { %s330_s28 = sshll.u32 %s1372_s7, 4  ;;  %s1180_s29 = smov [#allocation4]   ;;  %s331_s28 = int_to_ptr.hbm [resolvable:$true] %s330_s28 }
   0x7   : > { %p1074_p4 = pneg %p1259_p3  ;;  %s332_s30 = sshll.u32 %s1180_s29, 4  ;;  %s333_s30 = int_to_ptr.vmem [resolvable:$true] %s332_s30 }
   0x8   : > { %s1181_s12 = smov 64   ;;  %s1182_s13 = smov 4  }
   0x9   : > { %p1075_p5 = pnand %p1255_p2, %p1074_p4  ;;  %366 = sbr.rel (%p1259_p3) target bundleno = 735 (0x2df), region = 64 }
   0xb   : > { %1077 = dma.hbm_to_vmem [thread:$0]  (!%p1075_p5), %s314_s20, 1024, %s316_s25, [#allocation3], %s1181_s12, %s1181_s12, %s1182_s13  }
   0xc   : > { %1080 = dma.hbm_to_vmem [thread:$0]  (!%p1075_p5), %s331_s28, 1024, %s333_s30, [#allocation5], %s1181_s12, %s1181_s12, %s1182_s13  }
   0xe   : > { %1168 = dma.done.wait (%p1255_p2), [#allocation3], 1024  }
   0xf   : > { %1170 = vsyncadd (%p1255_p2), [#allocation3], 4294966272 }
  0x10   : > { %1172 = dma.done.wait (%p1255_p2), [#allocation5], 1024  }
  0x11   : > { %1174 = vsyncadd (%p1255_p2), [#allocation5], 4294966272  ;;  %s894_s14 = sshll.u32 %s885_s21, 1  ;;  %vm443_vm0 = vcmask 1043456   ;;  %vm444_vm1 = vcmask 1044480   ;;  %v1183_v0 = vmov 65535  }
  0x12   : > { %p413_p6 = scmp.lt.s32.totalorder %s894_s14, 3  ;;  %v445_v1 = vsel %vm443_vm0, 4294967295, %v1183_v0  ;;  %v900_v2 = vld [vmem:[%s1366_s1] sm:$0xf]  ;;  %v1033_v3 = vld [vmem:[%s1366_s1] sm:$0x10] }
  0x13   : > { %v446_v4 = vsel %vm444_vm1, %v445_v1, 0  ;;  %v901_v5 = vor.u32 %v1033_v3, %v900_v2  ;;  %v1041_v8 = vld [vmem:[%s1368_s3 + $0x38] sm:$0xff]  ;;  %v1040_v10 = vld [vmem:[%s1368_s3 + $0x30] sm:$0xff]  ;;  %vm439_vm2 = vcmask 72704   ;;  %v1039_v12 = vld [vmem:[%s1368_s3 + $0x28] sm:$0xff]  ;;  %vm804_vm3 = vcmask 15360  }
  0x14   : > { %s1380_s14 = smov (!%p413_p6, %s894_s14), 3  ;;  %535 = vmatpush.bf16.msra.mxu1 %v1041_v8  ;;  %v1038_v13 = vld [vmem:[%s1368_s3 + $0x20] sm:$0xff]  ;;  %v1037_v14 = vld [vmem:[%s1368_s3 + $0x18] sm:$0xff]  ;;  %v1036_v15 = vld [vmem:[%s1368_s3 + $0x10] sm:$0xff] }
  0x15   : > { %s895_s15 = sshll.u32 %s1380_s14, 3  ;;  %v448_v9 = vand.u32 %v901_v5, %v446_v4  ;;  %v1035_v16 = vld [vmem:[%s1368_s3 + $0x8] sm:$0xff]  ;;  %v1034_v17 = vld [vmem:[%s1368_s3] sm:$0xff]  ;;  %v1049_v18 = vld [vmem:[#allocation2 + $0x38] sm:$0xff] }
  0x16   : > { %s416_s19 = scalar_lea.vmem %s1365_s0, %s895_s15  ;;  %620 = vmatpush.bf16.msra.mxu2 %v1049_v18  ;;  %v1048_v19 = vld [vmem:[#allocation2 + $0x30] sm:$0xff]  ;;  %v1047_v20 = vld [vmem:[#allocation2 + $0x28] sm:$0xff]  ;;  %v1046_v21 = vld [vmem:[#allocation2 + $0x20] sm:$0xff]  ;;  %s422_s20 = scalar_lea.vmem %s1376_s11, %s895_s15 }
  0x17   : > { %v425_v6 = vld [vmem:[%s416_s19] sm:$0xff]  ;;  %v426_v7 = vld [vmem:[%s416_s19 + $0x8] sm:$0xff]  ;;  %457 = vmatpush.bf16.msra.mxu0 %v448_v9  ;;  %v1045_v30 = vld [vmem:[#allocation2 + $0x18] sm:$0xff] }
  0x18   : > { %v430_v11 = vpack.c.bf16 %v426_v7, %v425_v6  ;;  %536 = vmatpush.bf16.msra.mxu1 %v1040_v10  ;;  %v1098_v23 = vld [vmem:[%s1367_s2] ss:$0 sm:$0xff]  ;;  %v1044_v31 = vld [vmem:[#allocation2 + $0x10] sm:$0xff]  ;;  %v1043_v32 = vld [vmem:[#allocation2 + $0x8] sm:$0xff] }
  0x19   : > { %v1042_v33 = vld [vmem:[#allocation2] sm:$0xff]  ;;  %v1057_v34 = vld [vmem:[#allocation4 + $0x38] sm:$0xff]  ;;  %v1056_v35 = vld [vmem:[#allocation4 + $0x30] sm:$0xff] }
  0x1a   : > { %902 = vmatmul.msk.bf16.vlgmr.msra.gmra.mxu0 %vm439_vm2, %v430_v11  ;;  %621 = vmatpush.bf16.msra.mxu2 %v1048_v19  ;;  %v1055_v36 = vld [vmem:[#allocation4 + $0x28] sm:$0xff]  ;;  %v1054_v37 = vld [vmem:[#allocation4 + $0x20] sm:$0xff]  ;;  %v1053_v46 = vld [vmem:[#allocation4 + $0x18] sm:$0xff] }
  0x1b   : > { %705 = vmatpush.bf16.msra.mxu3 %v1057_v34  ;;  %v1099_v39 = vld [vmem:[%s1369_s4] ss:$0 sm:$0xff]  ;;  %v1052_v47 = vld [vmem:[#allocation4 + $0x10] sm:$0xff]  ;;  %v1051_v48 = vld [vmem:[#allocation4 + $0x8] sm:$0xff] }
  0x1c   : > { %537 = vmatpush.bf16.msra.mxu1 %v1039_v12  ;;  %v1050_v49 = vld [vmem:[#allocation4] sm:$0xff]  ;;  %v1065_v50 = vld [vmem:[%s1374_s9 + $0x38] sm:$0xff]  ;;  %v1064_v51 = vld [vmem:[%s1374_s9 + $0x30] sm:$0xff] }
  0x1d   : > { %790 = vmatpush.bf16.msrb.mxu0 %v1065_v50  ;;  %v1063_v52 = vld [vmem:[%s1374_s9 + $0x28] sm:$0xff]  ;;  %v1062_v53 = vld [vmem:[%s1374_s9 + $0x20] sm:$0xff]  ;;  %v1061_v62 = vld [vmem:[%s1374_s9 + $0x18] sm:$0xff] }
  0x1e   : > { %622 = vmatpush.bf16.msra.mxu2 %v1047_v20  ;;  %v1100_v55 = vld [vmem:[%s1371_s6] ss:$0 sm:$0xff]  ;;  %v1060_v63 = vld [vmem:[%s1374_s9 + $0x10] sm:$0xff]  ;;  %v1059_v0 = vld [vmem:[%s1374_s9 + $0x8] sm:$0xff] }
  0x1f   : > { %706 = vmatpush.bf16.msra.mxu3 %v1056_v35  ;;  %v1058_v1 = vld [vmem:[%s1374_s9] sm:$0xff] }
  0x20   : > { %538 = vmatpush.bf16.msra.mxu1 %v1038_v13  ;;  %v1101_v3 = vld [vmem:[%s1373_s8] ss:$0 sm:$0xff] }
  0x21   : > { %791 = vmatpush.bf16.msrb.mxu0 %v1064_v51  ;;  %v1102_v10 = vld [vmem:[%s1375_s10] ss:$0 sm:$0xff] }
  0x22   : > { %623 = vmatpush.bf16.msra.mxu2 %v1046_v21 }
  0x23   : > { %707 = vmatpush.bf16.msra.mxu3 %v1055_v36 }
  0x24   : > { %539 = vmatpush.bf16.msra.mxu1 %v1037_v14 }
  0x25   : > { %792 = vmatpush.bf16.msrb.mxu0 %v1063_v52 }
  0x26   : > { %624 = vmatpush.bf16.msra.mxu2 %v1045_v30 }
  0x27   : > { %708 = vmatpush.bf16.msra.mxu3 %v1054_v37 }
  0x28   : > { %540 = vmatpush.bf16.msra.mxu1 %v1036_v15 }
  0x29   : > { %793 = vmatpush.bf16.msrb.mxu0 %v1062_v53 }
  0x2a   : > { %625 = vmatpush.bf16.msra.mxu2 %v1044_v31 }
  0x2b   : > { %709 = vmatpush.bf16.msra.mxu3 %v1053_v46 }
  0x2c   : > { %541 = vmatpush.bf16.msra.mxu1 %v1035_v16 }
  0x2d   : > { %794 = vmatpush.bf16.msrb.mxu0 %v1061_v62 }
  0x2e   : > { %626 = vmatpush.bf16.msra.mxu2 %v1043_v32 }
  0x2f   : > { %710 = vmatpush.bf16.msra.mxu3 %v1052_v47 }
  0x30   : > { %542 = vmatpush.bf16.msra.mxu1 %v1034_v17 }
  0x31   : > { %795 = vmatpush.bf16.msrb.mxu0 %v1060_v63 }
  0x32   : > { %627 = vmatpush.bf16.msra.mxu2 %v1042_v33 }
  0x33   : > { %711 = vmatpush.bf16.msra.mxu3 %v1051_v48 }
  0x35   : > { %796 = vmatpush.bf16.msrb.mxu0 %v1059_v0 }
  0x37   : > { %712 = vmatpush.bf16.msra.mxu3 %v1050_v49 }
  0x39   : > { %797 = vmatpush.bf16.msrb.mxu0 %v1058_v1 }
  0x97   : > { %v459_v22 = vpop.f32.mrf.mxu0 }
  0x98   : > { %v460_v24 = vadd.f32 %v1098_v23, %v459_v22 }
  0x9a   : > { %v464_v27 = vmax.f32 %v460_v24, 0.0 }
  0x9f   : > { %v461_v25 = vpop.f32.mrf.mxu0 }
  0xa0   : > { %v462_v26 = vadd.f32 %v1098_v23, %v461_v25 }
  0xa2   : > { %v465_v28 = vmax.f32 %v462_v26, 0.0 }
  0xa4   : > { %v483_v29 = vpack.c.bf16 %v465_v28, %v464_v27 }
  0xa6   : > { %543 = vmatmul.bf16.vlgmr.msra.gmra.mxu1 %v483_v29 }
 0x123   : > { %v544_v38 = vpop.f32.mrf.mxu1 }
 0x124   : > { %v545_v40 = vadd.f32 %v1099_v39, %v544_v38 }
 0x126   : > { %v549_v43 = vmax.f32 %v545_v40, 0.0 }
 0x12b   : > { %v546_v41 = vpop.f32.mrf.mxu1 }
 0x12c   : > { %v547_v42 = vadd.f32 %v1099_v39, %v546_v41 }
 0x12e   : > { %v550_v44 = vmax.f32 %v547_v42, 0.0 }
 0x130   : > { %v568_v45 = vpack.c.bf16 %v550_v44, %v549_v43 }
 0x132   : > { %628 = vmatmul.bf16.vlgmr.msra.gmra.mxu2 %v568_v45 }
 0x1b5   : > { %v629_v54 = vpop.f32.mrf.mxu2 }
 0x1b6   : > { %v630_v56 = vadd.f32 %v1100_v55, %v629_v54 }
 0x1b8   : > { %v634_v59 = vmax.f32 %v630_v56, 0.0 }
 0x1bd   : > { %v631_v57 = vpop.f32.mrf.mxu2 }
 0x1be   : > { %v632_v58 = vadd.f32 %v1100_v55, %v631_v57 }
 0x1c0   : > { %v635_v60 = vmax.f32 %v632_v58, 0.0 }
 0x1c2   : > { %v653_v61 = vpack.c.bf16 %v635_v60, %v634_v59 }
 0x1c4   : > { %713 = vmatmul.bf16.vlgmr.msra.gmra.mxu3 %v653_v61 }
 0x247   : > { %v714_v2 = vpop.f32.mrf.mxu3 }
 0x248   : > { %v715_v4 = vadd.f32 %v1101_v3, %v714_v2 }
 0x24a   : > { %v719_v7 = vmax.f32 %v715_v4, 0.0 }
 0x24f   : > { %v716_v5 = vpop.f32.mrf.mxu3 }
 0x250   : > { %v717_v6 = vadd.f32 %v1101_v3, %v716_v5 }
 0x252   : > { %v720_v8 = vmax.f32 %v717_v6, 0.0 }
 0x254   : > { %v738_v9 = vpack.c.bf16 %v720_v8, %v719_v7 }
 0x256   : > { %798 = vmatmul.bf16.vlgmr.msrb.gmra.mxu0 %v738_v9 }
 0x2d3   : > { %v799_v11 = vpop.f32.mrf.mxu0 }
 0x2d4   : > { %v800_v12 = vadd.f32 %v1102_v10, %v799_v11 }
 0x2d6   : > { %805 = vst.msk [vmem:[%s422_s20] sm:$0xff] %vm804_vm3, %v800_v12 }
 0x2db   : > { %v801_v13 = vpop.f32.mrf.mxu0 }
 0x2dc   : > { %v802_v14 = vadd.f32 %v1102_v10, %v801_v13 }
 0x2de   : > { %806 = vst.msk [vmem:[%s422_s20 + $0x8] sm:$0xff] %vm804_vm3, %v802_v14 }
 0x2df PF: > { %s23_s17 = sadd.s32 1, %s1177_s17  }
 0x2e0   : > { %p20_p7 = scmp.ge.s32.totalorder %s23_s17, 4  }
 0x2e2   :  { %22 = sbr.rel (!%p20_p7) target bundleno = 2 (0x2), region = 103 }
 0x2e7   :  { %829 = vsyncpa [#allocation3], 1 }
 0x2e8   :  { %831 = vsyncpa [#allocation3 + $0x1], 1 }
 0x2e9   :  { %832 = vsyncpa [#allocation5], 1 }

</bundles_post_ra>
